<compile_context>
chip_gen: v5e
topology: v5e:2x2
jax: 0.10.0
libtpu: 0.0.40
codegen_flags: <defaults>
</compile_context>

<pallas_src>
import jax
import jax.numpy as jnp
from jax.experimental import pallas as pl
from jax.experimental.pallas import tpu as pltpu


def _round_up(x, m):
    return (x + m - 1) // m * m


# ----------------------------------------------------------------------------
# Kernel: one grid step handles TM rows.  out = x @ w_eff^T + b_eff, computed
# as a VPU broadcast-multiply + lane reduction (no MXU needed for N == 1).
# ----------------------------------------------------------------------------
def _affine_reduce_kernel(x_ref, w_ref, b_ref, out_ref):
    x = x_ref[...].astype(jnp.float32)                  # (TM, dim)
    w = w_ref[...]                                      # (1, dim), broadcasts over rows
    acc = jnp.sum(x * w, axis=-1, keepdims=True)        # (TM, 1)
    out_ref[...] = (acc + b_ref[...]).astype(out_ref.dtype)


# ----------------------------------------------------------------------------
# Host-side affine collapse of the 5 linear layers (dropout = identity, eval).
# ----------------------------------------------------------------------------
def _collapse_params(params):
    """Returns (w_eff_row [1, dim], b_eff [1, 1]) in f32."""
    w1, b1 = params["w1"], params["b1"]
    w2, b2 = params["w2"], params["b2"]
    w3, b3 = params["w3"], params["b3"]
    w4, b4 = params["w4"], params["b4"]
    w5 = params["w5t"].T                                # (dim//16, 1), fc5 has no bias

    w_eff = w1 @ w2 @ w3 @ w4 @ w5                      # (dim, 1)
    b_eff = (((b1 @ w2 + b2) @ w3 + b3) @ w4 + b4) @ w5  # (1, 1)
    return w_eff.T.astype(jnp.float32), b_eff.astype(jnp.float32)


# ----------------------------------------------------------------------------
# Wrapper
# ----------------------------------------------------------------------------
def regression_forward(x, params, *, tm=1024):
    """x: [B, dim] (f32 or bf16).  params: w1..w4 ([in,out]), b1..b4 ([1,out]),
    w5t ([1, dim//16], fc5 weight pre-transposed).  Returns [B, 1] f32."""
    b_rows, dim = x.shape

    w_eff, b_eff = _collapse_params(params)

    # Row tile: as large as reasonable (amortize per-step overhead), multiple of 8.
    tm = max(8, min(tm, _round_up(b_rows, 8)))
    padded = _round_up(b_rows, tm)
    if padded != b_rows:
        x = jnp.pad(x, ((0, padded - b_rows), (0, 0)))
    grid = (padded // tm,)

    flops = 2 * padded * dim + padded
    bytes_accessed = (x.dtype.itemsize * x.size
                      + 4 * (w_eff.size + b_eff.size + padded))

    out = pl.pallas_call(
        _affine_reduce_kernel,
        out_shape=jax.ShapeDtypeStruct((padded, 1), jnp.float32),
        grid_spec=pltpu.PrefetchScalarGridSpec(
            num_scalar_prefetch=0,
            grid=grid,
            in_specs=[
                pl.BlockSpec((tm, dim), lambda i: (i, 0)),   # x rows (streamed)
                pl.BlockSpec((1, dim), lambda i: (0, 0)),    # w_eff (replicated)
                pl.BlockSpec((1, 1), lambda i: (0, 0)),      # b_eff (replicated)
            ],
            out_specs=pl.BlockSpec((tm, 1), lambda i: (i, 0)),
        ),
        compiler_params=pltpu.CompilerParams(
            dimension_semantics=("parallel",)),
        cost_estimate=pl.CostEstimate(flops=flops, transcendentals=0,
                                      bytes_accessed=bytes_accessed),
    )(x, w_eff, b_eff)

    return out[:b_rows]


# ----------------------------------------------------------------------------
# Pure-JAX reference (matches the PyTorch forward in eval mode, layer by layer)
# ----------------------------------------------------------------------------
def _regression_forward_ref(x, params):
    h = x @ params["w1"] + params["b1"]
    h = h @ params["w2"] + params["b2"]
    h = h @ params["w3"] + params["b3"]
    h = h @ params["w4"] + params["b4"]
    return h @ params["w5t"].T                           # fc5: no bias


# ----------------------------------------------------------------------------
if __name__ == "__main__":
    dim = 64                  # dim // 16 must be >= 1
    batch = 2000              # not a multiple of TM -> exercises the padding path

    key = jax.random.PRNGKey(0)
    keys = jax.random.split(key, 10)

    x = jax.random.normal(keys[0], (batch, dim), dtype=jnp.float32)

    dims = [dim, dim // 2, dim // 4, dim // 8, dim // 16, 1]
    params = {}
    kidx = 1
    for layer in range(1, 5):            # fc1..fc4 (with bias)
        fan_in, fan_out = dims[layer - 1], dims[layer]
        scale = 1.0 / jnp.sqrt(jnp.float32(fan_in))
        params[f"w{layer}"] = scale * jax.random.normal(
            keys[kidx], (fan_in, fan_out), dtype=jnp.float32)
        params[f"b{layer}"] = 0.1 * jax.random.normal(
            keys[kidx + 1], (1, fan_out), dtype=jnp.float32)
        kidx += 2
    # fc5: no bias; stored pre-transposed as [1, dim // 16].
    params["w5t"] = (1.0 / jnp.sqrt(jnp.float32(dims[4]))) * jax.random.normal(
        keys[kidx], (1, dims[4]), dtype=jnp.float32)

    out = regression_forward(x, params)
    out = jax.block_until_ready(out)

    ref = _regression_forward_ref(x, params)
    assert out.shape == (batch, 1)
    assert bool(jnp.all(jnp.isfinite(out)))
    assert jnp.allclose(out, ref, atol=2e-4, rtol=2e-4), \
        float(jnp.max(jnp.abs(out - ref)))

    print("KERNEL_OK")
</pallas_src>

<mosaic_0001>
module attributes {stable_mosaic.version = 11 : i64} {
  func.func @_affine_reduce_kernel(%arg0: i32, %arg1: memref<1024x64xf32, #tpu.memory_space<vmem>>, %arg2: memref<1x64xf32, #tpu.memory_space<vmem>>, %arg3: memref<1x1xf32, #tpu.memory_space<vmem>>, %arg4: memref<1024x1xf32, #tpu.memory_space<vmem>>) attributes {dimension_semantics = [#tpu.dimension_semantics<parallel>], iteration_bounds = array<i64: 2>, scalar_prefetch = 0 : i64, scratch_operands = 0 : i64, tpu.core_type = #tpu.core_type<tc>, window_params = [{transform_indices = @transform_0, window_bounds = array<i64: 1024, 64>}, {pipeline_mode = #tpu.pipeline_mode<synchronous>, transform_indices = @transform_1, window_bounds = array<i64: 1, 64>}, {pipeline_mode = #tpu.pipeline_mode<synchronous>, transform_indices = @transform_2, window_bounds = array<i64: 1, 1>}, {transform_indices = @transform_3, window_bounds = array<i64: 1024, 1>}]} {
    %c0 = arith.constant 0 : index
    %c0_0 = arith.constant 0 : index
    %0 = vector.load %arg1[%c0, %c0_0] : memref<1024x64xf32, #tpu.memory_space<vmem>>, vector<1024x64xf32>
    %c0_1 = arith.constant 0 : index
    %c0_2 = arith.constant 0 : index
    %1 = vector.load %arg2[%c0_1, %c0_2] : memref<1x64xf32, #tpu.memory_space<vmem>>, vector<1x64xf32>
    %2 = vector.broadcast %1 : vector<1x64xf32> to vector<1024x64xf32>
    %3 = arith.mulf %0, %2 : vector<1024x64xf32>
    %cst = arith.constant dense<0.000000e+00> : vector<1024xf32>
    %4 = vector.multi_reduction <add>, %3, %cst [1] : vector<1024x64xf32> to vector<1024xf32>
    %5 = vector.shape_cast %4 : vector<1024xf32> to vector<1024x1xf32>
    %c0_3 = arith.constant 0 : index
    %c0_4 = arith.constant 0 : index
    %6 = vector.load %arg3[%c0_3, %c0_4] : memref<1x1xf32, #tpu.memory_space<vmem>>, vector<1x1xf32>
    %7 = vector.broadcast %6 : vector<1x1xf32> to vector<1024x1xf32>
    %8 = arith.addf %5, %7 : vector<1024x1xf32>
    %c0_5 = arith.constant 0 : index
    %c0_6 = arith.constant 0 : index
    %9 = vector.load %arg4[%c0_5, %c0_6] : memref<1024x1xf32, #tpu.memory_space<vmem>>, vector<1024x1xf32>
    tpu.vector_store %arg4[%c0_5, %c0_6], %8 {strides = array<i32>} : memref<1024x1xf32, #tpu.memory_space<vmem>>, vector<1024x1xf32>,
    return
  }
  func.func @transform_0(%arg0: i32) -> (i32, i32) {
    %c0_i32 = arith.constant 0 : i32
    %c0_i32_0 = arith.constant 0 : i32
    return %arg0, %c0_i32 : i32, i32
  }
  func.func @transform_1(%arg0: i32) -> (i32, i32) {
    %c0_i32 = arith.constant 0 : i32
    %c0_i32_0 = arith.constant 0 : i32
    %c0_i32_1 = arith.constant 0 : i32
    return %c0_i32, %c0_i32_0 : i32, i32
  }
  func.func @transform_2(%arg0: i32) -> (i32, i32) {
    %c0_i32 = arith.constant 0 : i32
    %c0_i32_0 = arith.constant 0 : i32
    %c0_i32_1 = arith.constant 0 : i32
    return %c0_i32, %c0_i32_0 : i32, i32
  }
  func.func @transform_3(%arg0: i32) -> (i32, i32) {
    %c0_i32 = arith.constant 0 : i32
    %c0_i32_0 = arith.constant 0 : i32
    return %arg0, %c0_i32 : i32, i32
  }
}

</mosaic_0001>

<bundles_post_ra>
// kernel: tpu_custom_call.1
= control target key start
LH: loop header
LB: loop body
LE: loop exit
PB: predicated region body
PF: predicated region fallthrough
CT: control target
= control target key end

     0   :  { %s1192_s14 = smov 0   ;;  %s2002_s0 = inlined_call_operand.vmem [shape: f32[2048,64], index: 0, kind: input, shape index: {}]   ;;  %s2003_s1 = inlined_call_operand.vmem [shape: f32[1,64], index: 1, kind: input, shape index: {}]   ;;  %s2004_s2 = inlined_call_operand.<no memory space> [shape: f32[1,1], index: 2, kind: input, shape index: {}]   ;;  %s2005_s3 = inlined_call_operand.vmem [shape: f32[2048,1], index: 3, kind: output, shape index: {}]  }
   0x1   :  { %v8_v0 = vstv %s2004_s2 }
   0x2   :  { %9 = vst [vmem:[#allocation2] sm:$0x1] %v8_v0 }
   0x3 LB: > { %s1138_s15 = sadd.s32 4294967295, %s1167_s14   ;;  %p1142_p0 = scmp.ge.s32.totalorder %s1167_s14, 1  ;;  %s1167_s14 = sphi %s1192_s14, %s15_s14  }
   0x4   : > { %p140_p1 = scmp.lt.s32.totalorder %s1167_s14, 3 }
   0x6   : > { %p141_p2 = pnand %p1142_p0, %p140_p1 }
   0x7   : > { %s1143_s16 = sshll.u32 (!%p141_p2), %s1138_s15, 7 }
   0x8   : > { %144 = sbr.rel (%p141_p2) target bundleno = 476 (0x1dc), region = 32  ;;  %p165_p3 = scmp.lt.s32.totalorder (!%p141_p2), %s1143_s16, 255 }
   0xd   : > { %s2007_s16 = smov (!%p165_p3, %s1143_s16), 255  ;;  %v1205_v1 = vld [vmem:[%s2003_s1] ss:$0 sm:$0xff]  ;;  %vm436_vm0 = vcmask 523264   ;;  %vm953_vm1 = vcmask 7168  }
   0xe   : > { %s1144_s18 = sshll.u32 %s2007_s16, 3 }
   0xf   : > { %s1213_s21 = scalar_lea.vmem %s2002_s0, %s1144_s18  ;;  %s1363_s24 = scalar_lea.vmem %s2005_s3, %s1144_s18 }
  0x10   : > { %v178_v2 = vld [vmem:[%s1213_s21 + $0x10] sm:$0xff]  ;;  %v176_v3 = vld [vmem:[%s1213_s21] sm:$0xff]  ;;  %v179_v8 = vld [vmem:[%s1213_s21 + $0x18] sm:$0xff] }
  0x11   : > { %v180_v4 = vld [vmem:[%s1213_s21 + $0x20] sm:$0xff]  ;;  %v310_v5 = vmul.f32 %v1205_v1, %v178_v2  ;;  %v308_v6 = vmul.f32 %v1205_v1, %v176_v3  ;;  %v177_v9 = vld [vmem:[%s1213_s21 + $0x8] sm:$0xff]  ;;  %v311_v14 = vmul.f32 %v1205_v1, %v179_v8  ;;  %v183_v20 = vld [vmem:[%s1213_s21 + $0x38] sm:$0xff] }
  0x12   : > { %v312_v7 = vmul.f32 %v1205_v1, %v180_v4  ;;  %v181_v13 = vld [vmem:[%s1213_s21 + $0x28] sm:$0xff]  ;;  %v309_v15 = vmul.f32 %v1205_v1, %v177_v9  ;;  %v182_v21 = vld [vmem:[%s1213_s21 + $0x30] sm:$0xff]  ;;  %v184_v22 = vld [vmem:[%s1213_s21 + $0x40] sm:$0xff]  ;;  %v315_v23 = vmul.f32 %v1205_v1, %v183_v20 }
  0x13   : > { %v443_v10 = vsel %vm436_vm0, %v310_v5, 0.0  ;;  %v437_v11 = vsel %vm436_vm0, %v308_v6, 0.0  ;;  %v313_v16 = vmul.f32 %v1205_v1, %v181_v13  ;;  %v446_v17 = vsel %vm436_vm0, %v311_v14, 0.0  ;;  %v186_v29 = vld [vmem:[%s1213_s21 + $0x50] sm:$0xff]  ;;  %v185_v30 = vld [vmem:[%s1213_s21 + $0x48] sm:$0xff]  ;;  %v187_v31 = vld [vmem:[%s1213_s21 + $0x58] sm:$0xff] }
  0x14   : > { %v449_v12 = vsel %vm436_vm0, %v312_v7, 0.0  ;;  %444 = vadd.xlane.f32.xlu1 %v443_v10  ;;  %438 = vadd.xlane.f32.xlu0 %v437_v11  ;;  %v440_v18 = vsel %vm436_vm0, %v309_v15, 0.0  ;;  %v314_v24 = vmul.f32 %v1205_v1, %v182_v21  ;;  %v316_v25 = vmul.f32 %v1205_v1, %v184_v22  ;;  %v189_v38 = vld [vmem:[%s1213_s21 + $0x68] sm:$0xff]  ;;  %v188_v39 = vld [vmem:[%s1213_s21 + $0x60] sm:$0xff]  ;;  %v190_v40 = vld [vmem:[%s1213_s21 + $0x70] sm:$0xff] }
  0x15   : > { %450 = vadd.xlane.f32.xlu2 %v449_v12  ;;  %v452_v19 = vsel %vm436_vm0, %v313_v16, 0.0  ;;  %v458_v26 = vsel %vm436_vm0, %v315_v23, 0.0  ;;  %v318_v32 = vmul.f32 %v1205_v1, %v186_v29  ;;  %v317_v33 = vmul.f32 %v1205_v1, %v185_v30  ;;  %v192_v47 = vld [vmem:[%s1213_s21 + $0x80] sm:$0xff]  ;;  %v191_v48 = vld [vmem:[%s1213_s21 + $0x78] sm:$0xff]  ;;  %v193_v49 = vld [vmem:[%s1213_s21 + $0x88] sm:$0xff] }
  0x16   : > { %v455_v27 = vsel %vm436_vm0, %v314_v24, 0.0  ;;  %v461_v28 = vsel %vm436_vm0, %v316_v25, 0.0  ;;  %v319_v34 = vmul.f32 %v1205_v1, %v187_v31  ;;  %v321_v41 = vmul.f32 %v1205_v1, %v189_v38  ;;  %v195_v56 = vld [vmem:[%s1213_s21 + $0x98] sm:$0xff]  ;;  %v194_v57 = vld [vmem:[%s1213_s21 + $0x90] sm:$0xff]  ;;  %v196_v58 = vld [vmem:[%s1213_s21 + $0xa0] sm:$0xff] }
  0x17   : > { %v467_v35 = vsel %vm436_vm0, %v318_v32, 0.0  ;;  %v464_v36 = vsel %vm436_vm0, %v317_v33, 0.0  ;;  %v320_v42 = vmul.f32 %v1205_v1, %v188_v39  ;;  %v322_v43 = vmul.f32 %v1205_v1, %v190_v40  ;;  %v198_v2 = vld [vmem:[%s1213_s21 + $0xb0] sm:$0xff]  ;;  %v197_v3 = vld [vmem:[%s1213_s21 + $0xa8] sm:$0xff]  ;;  %v199_v4 = vld [vmem:[%s1213_s21 + $0xb8] sm:$0xff] }
  0x18   : > { %v470_v37 = vsel %vm436_vm0, %v319_v34, 0.0  ;;  %v476_v44 = vsel %vm436_vm0, %v321_v41, 0.0  ;;  %v324_v50 = vmul.f32 %v1205_v1, %v192_v47  ;;  %v323_v51 = vmul.f32 %v1205_v1, %v191_v48  ;;  %v201_v11 = vld [vmem:[%s1213_s21 + $0xc8] sm:$0xff]  ;;  %v200_v12 = vld [vmem:[%s1213_s21 + $0xc0] sm:$0xff]  ;;  %v202_v13 = vld [vmem:[%s1213_s21 + $0xd0] sm:$0xff] }
  0x19   : > { %v473_v45 = vsel %vm436_vm0, %v320_v42, 0.0  ;;  %v479_v46 = vsel %vm436_vm0, %v322_v43, 0.0  ;;  %v325_v52 = vmul.f32 %v1205_v1, %v193_v49  ;;  %v327_v59 = vmul.f32 %v1205_v1, %v195_v56  ;;  %v204_v20 = vld [vmem:[%s1213_s21 + $0xe0] sm:$0xff]  ;;  %v203_v21 = vld [vmem:[%s1213_s21 + $0xd8] sm:$0xff]  ;;  %v205_v22 = vld [vmem:[%s1213_s21 + $0xe8] sm:$0xff] }
  0x1a   : > { %v485_v53 = vsel %vm436_vm0, %v324_v50, 0.0  ;;  %v482_v54 = vsel %vm436_vm0, %v323_v51, 0.0  ;;  %v326_v60 = vmul.f32 %v1205_v1, %v194_v57  ;;  %v328_v61 = vmul.f32 %v1205_v1, %v196_v58  ;;  %v207_v29 = vld [vmem:[%s1213_s21 + $0xf8] sm:$0xff]  ;;  %v206_v30 = vld [vmem:[%s1213_s21 + $0xf0] sm:$0xff]  ;;  %v208_v31 = vld [vmem:[%s1213_s21 + $0x100] sm:$0xff] }
  0x1b   : > { %v488_v55 = vsel %vm436_vm0, %v325_v52, 0.0  ;;  %v494_v62 = vsel %vm436_vm0, %v327_v59, 0.0  ;;  %v330_v5 = vmul.f32 %v1205_v1, %v198_v2  ;;  %v329_v6 = vmul.f32 %v1205_v1, %v197_v3  ;;  %v210_v38 = vld [vmem:[%s1213_s21 + $0x110] sm:$0xff]  ;;  %v209_v39 = vld [vmem:[%s1213_s21 + $0x108] sm:$0xff]  ;;  %v211_v40 = vld [vmem:[%s1213_s21 + $0x118] sm:$0xff] }
  0x1c   : > { %447 = vadd.xlane.f32.xlu1 %v446_v17  ;;  %441 = vadd.xlane.f32.xlu0 %v440_v18  ;;  %v491_v63 = vsel %vm436_vm0, %v326_v60, 0.0  ;;  %v497_v0 = vsel %vm436_vm0, %v328_v61, 0.0  ;;  %v331_v7 = vmul.f32 %v1205_v1, %v199_v4  ;;  %v333_v14 = vmul.f32 %v1205_v1, %v201_v11  ;;  %v213_v47 = vld [vmem:[%s1213_s21 + $0x128] sm:$0xff]  ;;  %v212_v48 = vld [vmem:[%s1213_s21 + $0x120] sm:$0xff]  ;;  %v214_v49 = vld [vmem:[%s1213_s21 + $0x130] sm:$0xff] }
  0x1d   : > { %453 = vadd.xlane.f32.xlu2 %v452_v19  ;;  %v503_v8 = vsel %vm436_vm0, %v330_v5, 0.0  ;;  %v500_v9 = vsel %vm436_vm0, %v329_v6, 0.0  ;;  %v332_v15 = vmul.f32 %v1205_v1, %v200_v12  ;;  %v334_v16 = vmul.f32 %v1205_v1, %v202_v13  ;;  %v216_v56 = vld [vmem:[%s1213_s21 + $0x140] sm:$0xff]  ;;  %v215_v57 = vld [vmem:[%s1213_s21 + $0x138] sm:$0xff]  ;;  %v217_v58 = vld [vmem:[%s1213_s21 + $0x148] sm:$0xff] }
  0x1e   : > { %v506_v10 = vsel %vm436_vm0, %v331_v7, 0.0  ;;  %v512_v17 = vsel %vm436_vm0, %v333_v14, 0.0  ;;  %v336_v23 = vmul.f32 %v1205_v1, %v204_v20  ;;  %v335_v24 = vmul.f32 %v1205_v1, %v203_v21  ;;  %v219_v2 = vld [vmem:[%s1213_s21 + $0x158] sm:$0xff]  ;;  %v218_v3 = vld [vmem:[%s1213_s21 + $0x150] sm:$0xff]  ;;  %v220_v4 = vld [vmem:[%s1213_s21 + $0x160] sm:$0xff] }
  0x1f   : > { %v509_v18 = vsel %vm436_vm0, %v332_v15, 0.0  ;;  %v515_v19 = vsel %vm436_vm0, %v334_v16, 0.0  ;;  %v337_v25 = vmul.f32 %v1205_v1, %v205_v22  ;;  %v339_v32 = vmul.f32 %v1205_v1, %v207_v29  ;;  %v222_v11 = vld [vmem:[%s1213_s21 + $0x170] sm:$0xff]  ;;  %v221_v12 = vld [vmem:[%s1213_s21 + $0x168] sm:$0xff]  ;;  %v223_v13 = vld [vmem:[%s1213_s21 + $0x178] sm:$0xff] }
  0x20   : > { %v338_v33 = vmul.f32 %v1205_v1, %v206_v30  ;;  %v340_v34 = vmul.f32 %v1205_v1, %v208_v31  ;;  %v342_v41 = vmul.f32 %v1205_v1, %v210_v38  ;;  %v341_v42 = vmul.f32 %v1205_v1, %v209_v39  ;;  %v1353_v14 = vld [vmem:[#allocation2] ss:$0 sm:$0xff]  ;;  %v226_v29 = vld [vmem:[%s1213_s21 + $0x190] sm:$0xff] }
  0x21   : > { %v343_v43 = vmul.f32 %v1205_v1, %v211_v40  ;;  %v345_v50 = vmul.f32 %v1205_v1, %v213_v47  ;;  %v344_v51 = vmul.f32 %v1205_v1, %v212_v48  ;;  %v346_v52 = vmul.f32 %v1205_v1, %v214_v49 }
  0x22   : > { %v348_v59 = vmul.f32 %v1205_v1, %v216_v56  ;;  %v347_v60 = vmul.f32 %v1205_v1, %v215_v57  ;;  %v349_v61 = vmul.f32 %v1205_v1, %v217_v58  ;;  %v351_v5 = vmul.f32 %v1205_v1, %v219_v2  ;;  %v231_v57 = vld [vmem:[%s1213_s21 + $0x1b8] sm:$0xff]  ;;  %v230_v58 = vld [vmem:[%s1213_s21 + $0x1b0] sm:$0xff] }
  0x23   : > { %v350_v6 = vmul.f32 %v1205_v1, %v218_v3  ;;  %v352_v7 = vmul.f32 %v1205_v1, %v220_v4  ;;  %v354_v15 = vmul.f32 %v1205_v1, %v222_v11  ;;  %v353_v16 = vmul.f32 %v1205_v1, %v221_v12  ;;  %v235_v11 = vld [vmem:[%s1213_s21 + $0x1d8] sm:$0xff] }
  0x24   : > { %459 = vadd.xlane.f32.xlu1 %v458_v26  ;;  %456 = vadd.xlane.f32.xlu0 %v455_v27  ;;  %v521_v26 = vsel %vm436_vm0, %v336_v23, 0.0  ;;  %v518_v27 = vsel %vm436_vm0, %v335_v24, 0.0 }
  0x25   : > { %462 = vadd.xlane.f32.xlu2 %v461_v28  ;;  %v524_v28 = vsel %vm436_vm0, %v337_v25, 0.0  ;;  %v575_v23 = vsel %vm436_vm0, %v354_v15, 0.0  ;;  %v572_v24 = vsel %vm436_vm0, %v353_v16, 0.0  ;;  %v367_v15 = vmul.f32 %v1205_v1, %v235_v11 }
  0x2c   : > { %468 = vadd.xlane.f32.xlu1 %v467_v35  ;;  %465 = vadd.xlane.f32.xlu0 %v464_v36  ;;  %v530_v35 = vsel %vm436_vm0, %v339_v32, 0.0  ;;  %v527_v36 = vsel %vm436_vm0, %v338_v33, 0.0  ;;  %v358_v32 = vmul.f32 %v1205_v1, %v226_v29 }
  0x2d   : > { %471 = vadd.xlane.f32.xlu2 %v470_v37  ;;  %v533_v37 = vsel %vm436_vm0, %v340_v34, 0.0 }
  0x34   : > { %477 = vadd.xlane.f32.xlu1 %v476_v44  ;;  %474 = vadd.xlane.f32.xlu0 %v473_v45  ;;  %v539_v44 = vsel %vm436_vm0, %v342_v41, 0.0  ;;  %v536_v45 = vsel %vm436_vm0, %v341_v42, 0.0  ;;  %v587_v41 = vsel %vm436_vm0, %v358_v32, 0.0  ;;  %v228_v42 = vld [vmem:[%s1213_s21 + $0x1a0] sm:$0xff] }
  0x35   : > { %480 = vadd.xlane.f32.xlu2 %v479_v46  ;;  %v542_v46 = vsel %vm436_vm0, %v343_v43, 0.0  ;;  %v227_v43 = vld [vmem:[%s1213_s21 + $0x198] sm:$0xff] }
  0x3c   : > { %486 = vadd.xlane.f32.xlu1 %v485_v53  ;;  %483 = vadd.xlane.f32.xlu0 %v482_v54  ;;  %v548_v53 = vsel %vm436_vm0, %v345_v50, 0.0  ;;  %v545_v54 = vsel %vm436_vm0, %v344_v51, 0.0 }
  0x3d   : > { %489 = vadd.xlane.f32.xlu2 %v488_v55  ;;  %v551_v55 = vsel %vm436_vm0, %v346_v52, 0.0 }
  0x44   : > { %495 = vadd.xlane.f32.xlu1 %v494_v62  ;;  %492 = vadd.xlane.f32.xlu0 %v491_v63  ;;  %v557_v62 = vsel %vm436_vm0, %v348_v59, 0.0  ;;  %v554_v63 = vsel %vm436_vm0, %v347_v60, 0.0  ;;  %v232_v59 = vld [vmem:[%s1213_s21 + $0x1c0] sm:$0xff]  ;;  %v363_v60 = vmul.f32 %v1205_v1, %v231_v57 }
  0x45   : > { %498 = vadd.xlane.f32.xlu2 %v497_v0  ;;  %v560_v0 = vsel %vm436_vm0, %v349_v61, 0.0  ;;  %v362_v61 = vmul.f32 %v1205_v1, %v230_v58  ;;  %v244_v57 = vld [vmem:[%s1213_s21 + $0x220] sm:$0xff] }
  0x4c   : > { %504 = vadd.xlane.f32.xlu1 %v503_v8  ;;  %501 = vadd.xlane.f32.xlu0 %v500_v9  ;;  %v566_v8 = vsel %vm436_vm0, %v351_v5, 0.0  ;;  %v563_v9 = vsel %vm436_vm0, %v350_v6, 0.0  ;;  %v602_v5 = vsel %vm436_vm0, %v363_v60, 0.0  ;;  %v599_v6 = vsel %vm436_vm0, %v362_v61, 0.0 }
  0x4d   : > { %507 = vadd.xlane.f32.xlu2 %v506_v10  ;;  %v569_v10 = vsel %vm436_vm0, %v352_v7, 0.0  ;;  %v376_v60 = vmul.f32 %v1205_v1, %v244_v57 }
  0x54   : > { %513 = vadd.xlane.f32.xlu1 %v512_v17  ;;  %510 = vadd.xlane.f32.xlu0 %v509_v18  ;;  %v355_v17 = vmul.f32 %v1205_v1, %v223_v13 }
  0x55   : > { %516 = vadd.xlane.f32.xlu2 %v515_v19 }
  0x5c   : > { %522 = vadd.xlane.f32.xlu1 %v521_v26  ;;  %519 = vadd.xlane.f32.xlu0 %v518_v27  ;;  %v578_v26 = vsel %vm436_vm0, %v355_v17, 0.0  ;;  %v225_v27 = vld [vmem:[%s1213_s21 + $0x188] sm:$0xff] }
  0x5d   : > { %525 = vadd.xlane.f32.xlu2 %v524_v28  ;;  %v224_v28 = vld [vmem:[%s1213_s21 + $0x180] sm:$0xff]  ;;  %v357_v30 = vmul.f32 %v1205_v1, %v225_v27  ;;  %v238_v27 = vld [vmem:[%s1213_s21 + $0x1f0] sm:$0xff] }
  0x5e   : > { %v356_v31 = vmul.f32 %v1205_v1, %v224_v28 }
  0x5f   : > { %v584_v38 = vsel %vm436_vm0, %v357_v30, 0.0  ;;  %v370_v30 = vmul.f32 %v1205_v1, %v238_v27 }
  0x60   : > { %v581_v39 = vsel %vm436_vm0, %v356_v31, 0.0 }
  0x64   : > { %531 = vadd.xlane.f32.xlu1 %v530_v35  ;;  %528 = vadd.xlane.f32.xlu0 %v527_v36 }
  0x65   : > { %534 = vadd.xlane.f32.xlu2 %v533_v37 }
  0x6c   : > { %540 = vadd.xlane.f32.xlu1 %v539_v44  ;;  %537 = vadd.xlane.f32.xlu0 %v536_v45  ;;  %v229_v44 = vld [vmem:[%s1213_s21 + $0x1a8] sm:$0xff]  ;;  %v360_v45 = vmul.f32 %v1205_v1, %v228_v42 }
  0x6d   : > { %543 = vadd.xlane.f32.xlu2 %v542_v46  ;;  %v359_v46 = vmul.f32 %v1205_v1, %v227_v43  ;;  %v361_v47 = vmul.f32 %v1205_v1, %v229_v44  ;;  %v241_v42 = vld [vmem:[%s1213_s21 + $0x208] sm:$0xff] }
  0x6f   : > { %v596_v56 = vsel %vm436_vm0, %v361_v47, 0.0 }
  0x74   : > { %549 = vadd.xlane.f32.xlu1 %v548_v53  ;;  %546 = vadd.xlane.f32.xlu0 %v545_v54  ;;  %v593_v53 = vsel %vm436_vm0, %v360_v45, 0.0  ;;  %v590_v54 = vsel %vm436_vm0, %v359_v46, 0.0  ;;  %v373_v45 = vmul.f32 %v1205_v1, %v241_v42 }
  0x75   : > { %552 = vadd.xlane.f32.xlu2 %v551_v55 }
  0x7c   : > { %558 = vadd.xlane.f32.xlu1 %v557_v62  ;;  %555 = vadd.xlane.f32.xlu0 %v554_v63  ;;  %v364_v62 = vmul.f32 %v1205_v1, %v232_v59 }
  0x7d   : > { %561 = vadd.xlane.f32.xlu2 %v560_v0 }
  0x84   : > { %567 = vadd.xlane.f32.xlu1 %v566_v8  ;;  %564 = vadd.xlane.f32.xlu0 %v563_v9  ;;  %v605_v8 = vsel %vm436_vm0, %v364_v62, 0.0  ;;  %v234_v9 = vld [vmem:[%s1213_s21 + $0x1d0] sm:$0xff] }
  0x85   : > { %570 = vadd.xlane.f32.xlu2 %v569_v10  ;;  %v233_v10 = vld [vmem:[%s1213_s21 + $0x1c8] sm:$0xff]  ;;  %v366_v12 = vmul.f32 %v1205_v1, %v234_v9  ;;  %v247_v9 = vld [vmem:[%s1213_s21 + $0x238] sm:$0xff] }
  0x86   : > { %v365_v13 = vmul.f32 %v1205_v1, %v233_v10 }
  0x87   : > { %v445_v18 = vpop.xlane.xlu1 %444  ;;  %v439_v19 = vpop.xlane.xlu0 %438 }
  0x88   : > { %v827_v20 = vadd.f32 %v1353_v14, %v445_v18  ;;  %v825_v21 = vadd.f32 %v1353_v14, %v439_v19  ;;  %v451_v22 = vpop.xlane.xlu2 %450 }
  0x89   : > { %v829_v25 = vadd.f32 %v1353_v14, %v451_v22  ;;  %v608_v22 = vsel %vm436_vm0, %v365_v13, 0.0 }
  0x8a   : > { %956 = vst.msk [vmem:[%s1363_s24 + $0x10] sm:$0xff] %vm953_vm1, %v827_v20 }
  0x8b   : > { %954 = vst.msk [vmem:[%s1363_s24] sm:$0xff] %vm953_vm1, %v825_v21  ;;  %v611_v21 = vsel %vm436_vm0, %v366_v12, 0.0  ;;  %v379_v12 = vmul.f32 %v1205_v1, %v247_v9 }
  0x8c   : > { %576 = vadd.xlane.f32.xlu1 %v575_v23  ;;  %573 = vadd.xlane.f32.xlu0 %v572_v24  ;;  %958 = vst.msk [vmem:[%s1363_s24 + $0x20] sm:$0xff] %vm953_vm1, %v829_v25  ;;  %v614_v24 = vsel %vm436_vm0, %v367_v15, 0.0  ;;  %v237_v25 = vld [vmem:[%s1213_s21 + $0x1e8] sm:$0xff] }
  0x8d   : > { %579 = vadd.xlane.f32.xlu2 %v578_v26  ;;  %v236_v26 = vld [vmem:[%s1213_s21 + $0x1e0] sm:$0xff]  ;;  %v369_v28 = vmul.f32 %v1205_v1, %v237_v25  ;;  %v250_v25 = vld [vmem:[%s1213_s21 + $0x250] sm:$0xff] }
  0x8e   : > { %v368_v29 = vmul.f32 %v1205_v1, %v236_v26 }
  0x8f   : > { %v448_v33 = vpop.xlane.xlu1 %447  ;;  %v442_v34 = vpop.xlane.xlu0 %441 }
  0x90   : > { %v828_v35 = vadd.f32 %v1353_v14, %v448_v33  ;;  %v826_v36 = vadd.f32 %v1353_v14, %v442_v34  ;;  %v454_v37 = vpop.xlane.xlu2 %453 }
  0x91   : > { %v830_v40 = vadd.f32 %v1353_v14, %v454_v37  ;;  %v617_v37 = vsel %vm436_vm0, %v368_v29, 0.0 }
  0x92   : > { %957 = vst.msk [vmem:[%s1363_s24 + $0x18] sm:$0xff] %vm953_vm1, %v828_v35 }
  0x93   : > { %955 = vst.msk [vmem:[%s1363_s24 + $0x8] sm:$0xff] %vm953_vm1, %v826_v36  ;;  %v620_v36 = vsel %vm436_vm0, %v369_v28, 0.0  ;;  %v382_v28 = vmul.f32 %v1205_v1, %v250_v25 }
  0x94   : > { %585 = vadd.xlane.f32.xlu1 %v584_v38  ;;  %582 = vadd.xlane.f32.xlu0 %v581_v39  ;;  %959 = vst.msk [vmem:[%s1363_s24 + $0x28] sm:$0xff] %vm953_vm1, %v830_v40  ;;  %v623_v39 = vsel %vm436_vm0, %v370_v30, 0.0  ;;  %v240_v40 = vld [vmem:[%s1213_s21 + $0x200] sm:$0xff] }
  0x95   : > { %588 = vadd.xlane.f32.xlu2 %v587_v41  ;;  %v239_v41 = vld [vmem:[%s1213_s21 + $0x1f8] sm:$0xff]  ;;  %v372_v43 = vmul.f32 %v1205_v1, %v240_v40  ;;  %v253_v40 = vld [vmem:[%s1213_s21 + $0x268] sm:$0xff] }
  0x96   : > { %v371_v44 = vmul.f32 %v1205_v1, %v239_v41 }
  0x97   : > { %v460_v48 = vpop.xlane.xlu1 %459  ;;  %v457_v49 = vpop.xlane.xlu0 %456 }
  0x98   : > { %v832_v50 = vadd.f32 %v1353_v14, %v460_v48  ;;  %v831_v51 = vadd.f32 %v1353_v14, %v457_v49  ;;  %v463_v52 = vpop.xlane.xlu2 %462 }
  0x99   : > { %v833_v55 = vadd.f32 %v1353_v14, %v463_v52  ;;  %v626_v52 = vsel %vm436_vm0, %v371_v44, 0.0 }
  0x9a   : > { %961 = vst.msk [vmem:[%s1363_s24 + $0x38] sm:$0xff] %vm953_vm1, %v832_v50 }
  0x9b   : > { %960 = vst.msk [vmem:[%s1363_s24 + $0x30] sm:$0xff] %vm953_vm1, %v831_v51  ;;  %v629_v51 = vsel %vm436_vm0, %v372_v43, 0.0  ;;  %v385_v43 = vmul.f32 %v1205_v1, %v253_v40 }
  0x9c   : > { %594 = vadd.xlane.f32.xlu1 %v593_v53  ;;  %591 = vadd.xlane.f32.xlu0 %v590_v54  ;;  %962 = vst.msk [vmem:[%s1363_s24 + $0x40] sm:$0xff] %vm953_vm1, %v833_v55  ;;  %v632_v54 = vsel %vm436_vm0, %v373_v45, 0.0  ;;  %v243_v55 = vld [vmem:[%s1213_s21 + $0x218] sm:$0xff] }
  0x9d   : > { %597 = vadd.xlane.f32.xlu2 %v596_v56  ;;  %v242_v56 = vld [vmem:[%s1213_s21 + $0x210] sm:$0xff]  ;;  %v375_v58 = vmul.f32 %v1205_v1, %v243_v55  ;;  %v256_v55 = vld [vmem:[%s1213_s21 + $0x280] sm:$0xff] }
  0x9e   : > { %v374_v59 = vmul.f32 %v1205_v1, %v242_v56 }
  0x9f   : > { %v469_v63 = vpop.xlane.xlu1 %468  ;;  %v466_v0 = vpop.xlane.xlu0 %465 }
  0xa0   : > { %v835_v2 = vadd.f32 %v1353_v14, %v469_v63  ;;  %v834_v3 = vadd.f32 %v1353_v14, %v466_v0  ;;  %v472_v4 = vpop.xlane.xlu2 %471 }
  0xa1   : > { %v836_v7 = vadd.f32 %v1353_v14, %v472_v4  ;;  %v635_v4 = vsel %vm436_vm0, %v374_v59, 0.0 }
  0xa2   : > { %964 = vst.msk [vmem:[%s1363_s24 + $0x50] sm:$0xff] %vm953_vm1, %v835_v2 }
  0xa3   : > { %963 = vst.msk [vmem:[%s1363_s24 + $0x48] sm:$0xff] %vm953_vm1, %v834_v3  ;;  %v638_v3 = vsel %vm436_vm0, %v375_v58, 0.0  ;;  %v388_v58 = vmul.f32 %v1205_v1, %v256_v55 }
  0xa4   : > { %603 = vadd.xlane.f32.xlu1 %v602_v5  ;;  %600 = vadd.xlane.f32.xlu0 %v599_v6  ;;  %965 = vst.msk [vmem:[%s1363_s24 + $0x58] sm:$0xff] %vm953_vm1, %v836_v7  ;;  %v641_v6 = vsel %vm436_vm0, %v376_v60, 0.0  ;;  %v246_v7 = vld [vmem:[%s1213_s21 + $0x230] sm:$0xff] }
  0xa5   : > { %606 = vadd.xlane.f32.xlu2 %v605_v8  ;;  %v245_v8 = vld [vmem:[%s1213_s21 + $0x228] sm:$0xff]  ;;  %v378_v10 = vmul.f32 %v1205_v1, %v246_v7  ;;  %v259_v7 = vld [vmem:[%s1213_s21 + $0x298] sm:$0xff] }
  0xa6   : > { %v377_v11 = vmul.f32 %v1205_v1, %v245_v8 }
  0xa7   : > { %v478_v16 = vpop.xlane.xlu1 %477  ;;  %v475_v17 = vpop.xlane.xlu0 %474 }
  0xa8   : > { %v838_v18 = vadd.f32 %v1353_v14, %v478_v16  ;;  %v837_v19 = vadd.f32 %v1353_v14, %v475_v17  ;;  %v481_v20 = vpop.xlane.xlu2 %480 }
  0xa9   : > { %v839_v23 = vadd.f32 %v1353_v14, %v481_v20  ;;  %v644_v20 = vsel %vm436_vm0, %v377_v11, 0.0 }
  0xaa   : > { %967 = vst.msk [vmem:[%s1363_s24 + $0x68] sm:$0xff] %vm953_vm1, %v838_v18 }
  0xab   : > { %966 = vst.msk [vmem:[%s1363_s24 + $0x60] sm:$0xff] %vm953_vm1, %v837_v19  ;;  %v647_v19 = vsel %vm436_vm0, %v378_v10, 0.0  ;;  %v391_v10 = vmul.f32 %v1205_v1, %v259_v7 }
  0xac   : > { %612 = vadd.xlane.f32.xlu1 %v611_v21  ;;  %609 = vadd.xlane.f32.xlu0 %v608_v22  ;;  %968 = vst.msk [vmem:[%s1363_s24 + $0x70] sm:$0xff] %vm953_vm1, %v839_v23  ;;  %v650_v22 = vsel %vm436_vm0, %v379_v12, 0.0  ;;  %v249_v23 = vld [vmem:[%s1213_s21 + $0x248] sm:$0xff] }
  0xad   : > { %615 = vadd.xlane.f32.xlu2 %v614_v24  ;;  %v248_v24 = vld [vmem:[%s1213_s21 + $0x240] sm:$0xff]  ;;  %v381_v26 = vmul.f32 %v1205_v1, %v249_v23  ;;  %v262_v23 = vld [vmem:[%s1213_s21 + $0x2b0] sm:$0xff] }
  0xae   : > { %v380_v27 = vmul.f32 %v1205_v1, %v248_v24 }
  0xaf   : > { %v487_v31 = vpop.xlane.xlu1 %486  ;;  %v484_v32 = vpop.xlane.xlu0 %483 }
  0xb0   : > { %v841_v33 = vadd.f32 %v1353_v14, %v487_v31  ;;  %v840_v34 = vadd.f32 %v1353_v14, %v484_v32  ;;  %v490_v35 = vpop.xlane.xlu2 %489 }
  0xb1   : > { %v842_v38 = vadd.f32 %v1353_v14, %v490_v35  ;;  %v653_v35 = vsel %vm436_vm0, %v380_v27, 0.0 }
  0xb2   : > { %970 = vst.msk [vmem:[%s1363_s24 + $0x80] sm:$0xff] %vm953_vm1, %v841_v33 }
  0xb3   : > { %969 = vst.msk [vmem:[%s1363_s24 + $0x78] sm:$0xff] %vm953_vm1, %v840_v34  ;;  %v656_v34 = vsel %vm436_vm0, %v381_v26, 0.0  ;;  %v394_v26 = vmul.f32 %v1205_v1, %v262_v23 }
  0xb4   : > { %621 = vadd.xlane.f32.xlu1 %v620_v36  ;;  %618 = vadd.xlane.f32.xlu0 %v617_v37  ;;  %971 = vst.msk [vmem:[%s1363_s24 + $0x88] sm:$0xff] %vm953_vm1, %v842_v38  ;;  %v659_v37 = vsel %vm436_vm0, %v382_v28, 0.0  ;;  %v252_v38 = vld [vmem:[%s1213_s21 + $0x260] sm:$0xff] }
  0xb5   : > { %624 = vadd.xlane.f32.xlu2 %v623_v39  ;;  %v251_v39 = vld [vmem:[%s1213_s21 + $0x258] sm:$0xff]  ;;  %v384_v41 = vmul.f32 %v1205_v1, %v252_v38  ;;  %v265_v38 = vld [vmem:[%s1213_s21 + $0x2c8] sm:$0xff] }
  0xb6   : > { %v383_v42 = vmul.f32 %v1205_v1, %v251_v39 }
  0xb7   : > { %v496_v46 = vpop.xlane.xlu1 %495  ;;  %v493_v47 = vpop.xlane.xlu0 %492 }
  0xb8   : > { %v844_v48 = vadd.f32 %v1353_v14, %v496_v46  ;;  %v843_v49 = vadd.f32 %v1353_v14, %v493_v47  ;;  %v499_v50 = vpop.xlane.xlu2 %498 }
  0xb9   : > { %v845_v53 = vadd.f32 %v1353_v14, %v499_v50  ;;  %v662_v50 = vsel %vm436_vm0, %v383_v42, 0.0 }
  0xba   : > { %973 = vst.msk [vmem:[%s1363_s24 + $0x98] sm:$0xff] %vm953_vm1, %v844_v48 }
  0xbb   : > { %972 = vst.msk [vmem:[%s1363_s24 + $0x90] sm:$0xff] %vm953_vm1, %v843_v49  ;;  %v665_v49 = vsel %vm436_vm0, %v384_v41, 0.0  ;;  %v397_v41 = vmul.f32 %v1205_v1, %v265_v38 }
  0xbc   : > { %630 = vadd.xlane.f32.xlu1 %v629_v51  ;;  %627 = vadd.xlane.f32.xlu0 %v626_v52  ;;  %974 = vst.msk [vmem:[%s1363_s24 + $0xa0] sm:$0xff] %vm953_vm1, %v845_v53  ;;  %v668_v52 = vsel %vm436_vm0, %v385_v43, 0.0  ;;  %v255_v53 = vld [vmem:[%s1213_s21 + $0x278] sm:$0xff] }
  0xbd   : > { %633 = vadd.xlane.f32.xlu2 %v632_v54  ;;  %v254_v54 = vld [vmem:[%s1213_s21 + $0x270] sm:$0xff]  ;;  %v387_v56 = vmul.f32 %v1205_v1, %v255_v53  ;;  %v268_v53 = vld [vmem:[%s1213_s21 + $0x2e0] sm:$0xff] }
  0xbe   : > { %v386_v57 = vmul.f32 %v1205_v1, %v254_v54 }
  0xbf   : > { %v505_v61 = vpop.xlane.xlu1 %504  ;;  %v502_v62 = vpop.xlane.xlu0 %501 }
  0xc0   : > { %v847_v63 = vadd.f32 %v1353_v14, %v505_v61  ;;  %v846_v0 = vadd.f32 %v1353_v14, %v502_v62  ;;  %v508_v2 = vpop.xlane.xlu2 %507 }
  0xc1   : > { %v848_v5 = vadd.f32 %v1353_v14, %v508_v2  ;;  %v671_v2 = vsel %vm436_vm0, %v386_v57, 0.0 }
  0xc2   : > { %976 = vst.msk [vmem:[%s1363_s24 + $0xb0] sm:$0xff] %vm953_vm1, %v847_v63 }
  0xc3   : > { %975 = vst.msk [vmem:[%s1363_s24 + $0xa8] sm:$0xff] %vm953_vm1, %v846_v0  ;;  %v674_v0 = vsel %vm436_vm0, %v387_v56, 0.0  ;;  %v400_v56 = vmul.f32 %v1205_v1, %v268_v53 }
  0xc4   : > { %639 = vadd.xlane.f32.xlu1 %v638_v3  ;;  %636 = vadd.xlane.f32.xlu0 %v635_v4  ;;  %977 = vst.msk [vmem:[%s1363_s24 + $0xb8] sm:$0xff] %vm953_vm1, %v848_v5  ;;  %v677_v4 = vsel %vm436_vm0, %v388_v58, 0.0  ;;  %v258_v5 = vld [vmem:[%s1213_s21 + $0x290] sm:$0xff] }
  0xc5   : > { %642 = vadd.xlane.f32.xlu2 %v641_v6  ;;  %v257_v6 = vld [vmem:[%s1213_s21 + $0x288] sm:$0xff]  ;;  %v390_v8 = vmul.f32 %v1205_v1, %v258_v5  ;;  %v1653_v5 = vld [vmem:[%s2003_s1] ss:$0 sm:$0xff] }
  0xc6   : > { %v389_v9 = vmul.f32 %v1205_v1, %v257_v6 }
  0xc7   : > { %v514_v13 = vpop.xlane.xlu1 %513  ;;  %v511_v15 = vpop.xlane.xlu0 %510 }
  0xc8   : > { %v850_v16 = vadd.f32 %v1353_v14, %v514_v13  ;;  %v849_v17 = vadd.f32 %v1353_v14, %v511_v15  ;;  %v517_v18 = vpop.xlane.xlu2 %516 }
  0xc9   : > { %v851_v21 = vadd.f32 %v1353_v14, %v517_v18  ;;  %v680_v18 = vsel %vm436_vm0, %v389_v9, 0.0 }
  0xca   : > { %979 = vst.msk [vmem:[%s1363_s24 + $0xc8] sm:$0xff] %vm953_vm1, %v850_v16 }
  0xcb   : > { %978 = vst.msk [vmem:[%s1363_s24 + $0xc0] sm:$0xff] %vm953_vm1, %v849_v17  ;;  %v683_v17 = vsel %vm436_vm0, %v390_v8, 0.0 }
  0xcc   : > { %648 = vadd.xlane.f32.xlu1 %v647_v19  ;;  %645 = vadd.xlane.f32.xlu0 %v644_v20  ;;  %980 = vst.msk [vmem:[%s1363_s24 + $0xd0] sm:$0xff] %vm953_vm1, %v851_v21  ;;  %v686_v20 = vsel %vm436_vm0, %v391_v10, 0.0  ;;  %v261_v21 = vld [vmem:[%s1213_s21 + $0x2a8] sm:$0xff] }
  0xcd   : > { %651 = vadd.xlane.f32.xlu2 %v650_v22  ;;  %v260_v22 = vld [vmem:[%s1213_s21 + $0x2a0] sm:$0xff]  ;;  %v393_v24 = vmul.f32 %v1205_v1, %v261_v21  ;;  %v274_v21 = vld [vmem:[%s1213_s21 + $0x310] sm:$0xff] }
  0xce   : > { %v392_v25 = vmul.f32 %v1205_v1, %v260_v22 }
  0xcf   : > { %v523_v29 = vpop.xlane.xlu1 %522  ;;  %v520_v30 = vpop.xlane.xlu0 %519 }
  0xd0   : > { %v853_v31 = vadd.f32 %v1353_v14, %v523_v29  ;;  %v852_v32 = vadd.f32 %v1353_v14, %v520_v30  ;;  %v526_v33 = vpop.xlane.xlu2 %525 }
  0xd1   : > { %v854_v36 = vadd.f32 %v1353_v14, %v526_v33  ;;  %v689_v33 = vsel %vm436_vm0, %v392_v25, 0.0 }
  0xd2   : > { %982 = vst.msk [vmem:[%s1363_s24 + $0xe0] sm:$0xff] %vm953_vm1, %v853_v31 }
  0xd3   : > { %981 = vst.msk [vmem:[%s1363_s24 + $0xd8] sm:$0xff] %vm953_vm1, %v852_v32  ;;  %v692_v32 = vsel %vm436_vm0, %v393_v24, 0.0  ;;  %v406_v24 = vmul.f32 %v1653_v5, %v274_v21 }
  0xd4   : > { %657 = vadd.xlane.f32.xlu1 %v656_v34  ;;  %654 = vadd.xlane.f32.xlu0 %v653_v35  ;;  %983 = vst.msk [vmem:[%s1363_s24 + $0xe8] sm:$0xff] %vm953_vm1, %v854_v36  ;;  %v695_v35 = vsel %vm436_vm0, %v394_v26, 0.0  ;;  %v264_v36 = vld [vmem:[%s1213_s21 + $0x2c0] sm:$0xff] }
  0xd5   : > { %660 = vadd.xlane.f32.xlu2 %v659_v37  ;;  %v263_v37 = vld [vmem:[%s1213_s21 + $0x2b8] sm:$0xff]  ;;  %v396_v39 = vmul.f32 %v1205_v1, %v264_v36  ;;  %v277_v36 = vld [vmem:[%s1213_s21 + $0x328] sm:$0xff] }
  0xd6   : > { %v395_v40 = vmul.f32 %v1205_v1, %v263_v37 }
  0xd7   : > { %v532_v44 = vpop.xlane.xlu1 %531  ;;  %v529_v45 = vpop.xlane.xlu0 %528 }
  0xd8   : > { %v856_v46 = vadd.f32 %v1353_v14, %v532_v44  ;;  %v855_v47 = vadd.f32 %v1353_v14, %v529_v45  ;;  %v535_v48 = vpop.xlane.xlu2 %534 }
  0xd9   : > { %v857_v51 = vadd.f32 %v1353_v14, %v535_v48  ;;  %v698_v48 = vsel %vm436_vm0, %v395_v40, 0.0 }
  0xda   : > { %985 = vst.msk [vmem:[%s1363_s24 + $0xf8] sm:$0xff] %vm953_vm1, %v856_v46 }
  0xdb   : > { %984 = vst.msk [vmem:[%s1363_s24 + $0xf0] sm:$0xff] %vm953_vm1, %v855_v47  ;;  %v701_v47 = vsel %vm436_vm0, %v396_v39, 0.0  ;;  %v409_v39 = vmul.f32 %v1653_v5, %v277_v36 }
  0xdc   : > { %666 = vadd.xlane.f32.xlu1 %v665_v49  ;;  %663 = vadd.xlane.f32.xlu0 %v662_v50  ;;  %986 = vst.msk [vmem:[%s1363_s24 + $0x100] sm:$0xff] %vm953_vm1, %v857_v51  ;;  %v704_v50 = vsel %vm436_vm0, %v397_v41, 0.0  ;;  %v267_v51 = vld [vmem:[%s1213_s21 + $0x2d8] sm:$0xff] }
  0xdd   : > { %669 = vadd.xlane.f32.xlu2 %v668_v52  ;;  %v266_v52 = vld [vmem:[%s1213_s21 + $0x2d0] sm:$0xff]  ;;  %v399_v54 = vmul.f32 %v1205_v1, %v267_v51  ;;  %v280_v51 = vld [vmem:[%s1213_s21 + $0x340] sm:$0xff] }
  0xde   : > { %v398_v55 = vmul.f32 %v1205_v1, %v266_v52  ;;  %v269_v1 = vld [vmem:[%s1213_s21 + $0x2e8] sm:$0xff] }
  0xdf   : > { %v541_v59 = vpop.xlane.xlu1 %540  ;;  %v538_v60 = vpop.xlane.xlu0 %537  ;;  %v401_v7 = vmul.f32 %v1653_v5, %v269_v1 }
  0xe0   : > { %v859_v61 = vadd.f32 %v1353_v14, %v541_v59  ;;  %v858_v62 = vadd.f32 %v1353_v14, %v538_v60  ;;  %v544_v63 = vpop.xlane.xlu2 %543 }
  0xe1   : > { %v860_v3 = vadd.f32 %v1353_v14, %v544_v63  ;;  %v707_v63 = vsel %vm436_vm0, %v398_v55, 0.0 }
  0xe2   : > { %988 = vst.msk [vmem:[%s1363_s24 + $0x110] sm:$0xff] %vm953_vm1, %v859_v61 }
  0xe3   : > { %987 = vst.msk [vmem:[%s1363_s24 + $0x108] sm:$0xff] %vm953_vm1, %v858_v62  ;;  %v710_v62 = vsel %vm436_vm0, %v399_v54, 0.0  ;;  %v412_v54 = vmul.f32 %v1653_v5, %v280_v51 }
  0xe4   : > { %675 = vadd.xlane.f32.xlu1 %v674_v0  ;;  %672 = vadd.xlane.f32.xlu0 %v671_v2  ;;  %989 = vst.msk [vmem:[%s1363_s24 + $0x118] sm:$0xff] %vm953_vm1, %v860_v3  ;;  %v713_v2 = vsel %vm436_vm0, %v400_v56, 0.0  ;;  %v270_v3 = vld [vmem:[%s1213_s21 + $0x2f0] sm:$0xff] }
  0xe5   : > { %678 = vadd.xlane.f32.xlu2 %v677_v4  ;;  %v271_v4 = vld [vmem:[%s1213_s21 + $0x2f8] sm:$0xff]  ;;  %v402_v6 = vmul.f32 %v1653_v5, %v270_v3 }
  0xe6   : > { %v403_v8 = vmul.f32 %v1653_v5, %v271_v4  ;;  %v283_v3 = vld [vmem:[%s1213_s21 + $0x358] sm:$0xff] }
  0xe7   : > { %v550_v11 = vpop.xlane.xlu1 %549  ;;  %v547_v12 = vpop.xlane.xlu0 %546 }
  0xe8   : > { %v862_v13 = vadd.f32 %v1353_v14, %v550_v11  ;;  %v861_v15 = vadd.f32 %v1353_v14, %v547_v12  ;;  %v553_v16 = vpop.xlane.xlu2 %552 }
  0xe9   : > { %v863_v19 = vadd.f32 %v1353_v14, %v553_v16  ;;  %v716_v16 = vsel %vm436_vm0, %v401_v7, 0.0 }
  0xea   : > { %991 = vst.msk [vmem:[%s1363_s24 + $0x128] sm:$0xff] %vm953_vm1, %v862_v13 }
  0xeb   : > { %990 = vst.msk [vmem:[%s1363_s24 + $0x120] sm:$0xff] %vm953_vm1, %v861_v15  ;;  %v719_v15 = vsel %vm436_vm0, %v402_v6, 0.0  ;;  %v415_v6 = vmul.f32 %v1653_v5, %v283_v3 }
  0xec   : > { %684 = vadd.xlane.f32.xlu1 %v683_v17  ;;  %681 = vadd.xlane.f32.xlu0 %v680_v18  ;;  %992 = vst.msk [vmem:[%s1363_s24 + $0x130] sm:$0xff] %vm953_vm1, %v863_v19  ;;  %v722_v18 = vsel %vm436_vm0, %v403_v8, 0.0  ;;  %v273_v19 = vld [vmem:[%s1213_s21 + $0x308] sm:$0xff] }
  0xed   : > { %687 = vadd.xlane.f32.xlu2 %v686_v20  ;;  %v272_v20 = vld [vmem:[%s1213_s21 + $0x300] sm:$0xff]  ;;  %v405_v22 = vmul.f32 %v1653_v5, %v273_v19  ;;  %v286_v19 = vld [vmem:[%s1213_s21 + $0x370] sm:$0xff] }
  0xee   : > { %v404_v23 = vmul.f32 %v1653_v5, %v272_v20 }
  0xef   : > { %v559_v27 = vpop.xlane.xlu1 %558  ;;  %v556_v28 = vpop.xlane.xlu0 %555 }
  0xf0   : > { %v865_v29 = vadd.f32 %v1353_v14, %v559_v27  ;;  %v864_v30 = vadd.f32 %v1353_v14, %v556_v28  ;;  %v562_v31 = vpop.xlane.xlu2 %561 }
  0xf1   : > { %v866_v34 = vadd.f32 %v1353_v14, %v562_v31  ;;  %v725_v31 = vsel %vm436_vm0, %v404_v23, 0.0 }
  0xf2   : > { %994 = vst.msk [vmem:[%s1363_s24 + $0x140] sm:$0xff] %vm953_vm1, %v865_v29 }
  0xf3   : > { %993 = vst.msk [vmem:[%s1363_s24 + $0x138] sm:$0xff] %vm953_vm1, %v864_v30  ;;  %v728_v30 = vsel %vm436_vm0, %v405_v22, 0.0  ;;  %v418_v22 = vmul.f32 %v1653_v5, %v286_v19 }
  0xf4   : > { %693 = vadd.xlane.f32.xlu1 %v692_v32  ;;  %690 = vadd.xlane.f32.xlu0 %v689_v33  ;;  %995 = vst.msk [vmem:[%s1363_s24 + $0x148] sm:$0xff] %vm953_vm1, %v866_v34  ;;  %v731_v33 = vsel %vm436_vm0, %v406_v24, 0.0  ;;  %v276_v34 = vld [vmem:[%s1213_s21 + $0x320] sm:$0xff] }
  0xf5   : > { %696 = vadd.xlane.f32.xlu2 %v695_v35  ;;  %v275_v35 = vld [vmem:[%s1213_s21 + $0x318] sm:$0xff]  ;;  %v408_v37 = vmul.f32 %v1653_v5, %v276_v34  ;;  %v289_v34 = vld [vmem:[%s1213_s21 + $0x388] sm:$0xff] }
  0xf6   : > { %v407_v38 = vmul.f32 %v1653_v5, %v275_v35 }
  0xf7   : > { %v568_v42 = vpop.xlane.xlu1 %567  ;;  %v565_v43 = vpop.xlane.xlu0 %564 }
  0xf8   : > { %v868_v44 = vadd.f32 %v1353_v14, %v568_v42  ;;  %v867_v45 = vadd.f32 %v1353_v14, %v565_v43  ;;  %v571_v46 = vpop.xlane.xlu2 %570 }
  0xf9   : > { %v869_v49 = vadd.f32 %v1353_v14, %v571_v46  ;;  %v734_v46 = vsel %vm436_vm0, %v407_v38, 0.0 }
  0xfa   : > { %997 = vst.msk [vmem:[%s1363_s24 + $0x158] sm:$0xff] %vm953_vm1, %v868_v44 }
  0xfb   : > { %996 = vst.msk [vmem:[%s1363_s24 + $0x150] sm:$0xff] %vm953_vm1, %v867_v45  ;;  %v737_v45 = vsel %vm436_vm0, %v408_v37, 0.0  ;;  %v421_v37 = vmul.f32 %v1653_v5, %v289_v34 }
  0xfc   : > { %702 = vadd.xlane.f32.xlu1 %v701_v47  ;;  %699 = vadd.xlane.f32.xlu0 %v698_v48  ;;  %998 = vst.msk [vmem:[%s1363_s24 + $0x160] sm:$0xff] %vm953_vm1, %v869_v49  ;;  %v740_v48 = vsel %vm436_vm0, %v409_v39, 0.0  ;;  %v279_v49 = vld [vmem:[%s1213_s21 + $0x338] sm:$0xff] }
  0xfd   : > { %705 = vadd.xlane.f32.xlu2 %v704_v50  ;;  %v278_v50 = vld [vmem:[%s1213_s21 + $0x330] sm:$0xff]  ;;  %v411_v52 = vmul.f32 %v1653_v5, %v279_v49  ;;  %v292_v49 = vld [vmem:[%s1213_s21 + $0x3a0] sm:$0xff] }
  0xfe   : > { %v410_v53 = vmul.f32 %v1653_v5, %v278_v50 }
  0xff   : > { %v577_v57 = vpop.xlane.xlu1 %576  ;;  %v574_v58 = vpop.xlane.xlu0 %573 }
 0x100   : > { %v871_v59 = vadd.f32 %v1353_v14, %v577_v57  ;;  %v870_v60 = vadd.f32 %v1353_v14, %v574_v58  ;;  %v580_v61 = vpop.xlane.xlu2 %579 }
 0x101   : > { %v872_v0 = vadd.f32 %v1353_v14, %v580_v61  ;;  %v743_v61 = vsel %vm436_vm0, %v410_v53, 0.0 }
 0x102   : > { %1000 = vst.msk [vmem:[%s1363_s24 + $0x170] sm:$0xff] %vm953_vm1, %v871_v59 }
 0x103   : > { %999 = vst.msk [vmem:[%s1363_s24 + $0x168] sm:$0xff] %vm953_vm1, %v870_v60  ;;  %v746_v60 = vsel %vm436_vm0, %v411_v52, 0.0  ;;  %v424_v52 = vmul.f32 %v1653_v5, %v292_v49 }
 0x104   : > { %711 = vadd.xlane.f32.xlu1 %v710_v62  ;;  %708 = vadd.xlane.f32.xlu0 %v707_v63  ;;  %1001 = vst.msk [vmem:[%s1363_s24 + $0x178] sm:$0xff] %vm953_vm1, %v872_v0  ;;  %v749_v63 = vsel %vm436_vm0, %v412_v54, 0.0  ;;  %v282_v0 = vld [vmem:[%s1213_s21 + $0x350] sm:$0xff] }
 0x105   : > { %714 = vadd.xlane.f32.xlu2 %v713_v2  ;;  %v281_v2 = vld [vmem:[%s1213_s21 + $0x348] sm:$0xff]  ;;  %v414_v1 = vmul.f32 %v1653_v5, %v282_v0  ;;  %v295_v0 = vld [vmem:[%s1213_s21 + $0x3b8] sm:$0xff] }
 0x106   : > { %v413_v4 = vmul.f32 %v1653_v5, %v281_v2  ;;  %v427_v3 = vmul.f32 %v1653_v5, %v295_v0 }
 0x107   : > { %v586_v9 = vpop.xlane.xlu1 %585  ;;  %v583_v10 = vpop.xlane.xlu0 %582 }
 0x108   : > { %v874_v11 = vadd.f32 %v1353_v14, %v586_v9  ;;  %v873_v12 = vadd.f32 %v1353_v14, %v583_v10  ;;  %v589_v13 = vpop.xlane.xlu2 %588 }
 0x109   : > { %v875_v17 = vadd.f32 %v1353_v14, %v589_v13  ;;  %v752_v13 = vsel %vm436_vm0, %v413_v4, 0.0 }
 0x10a   : > { %1003 = vst.msk [vmem:[%s1363_s24 + $0x188] sm:$0xff] %vm953_vm1, %v874_v11 }
 0x10b   : > { %1002 = vst.msk [vmem:[%s1363_s24 + $0x180] sm:$0xff] %vm953_vm1, %v873_v12  ;;  %v755_v12 = vsel %vm436_vm0, %v414_v1, 0.0 }
 0x10c   : > { %720 = vadd.xlane.f32.xlu1 %v719_v15  ;;  %717 = vadd.xlane.f32.xlu0 %v716_v16  ;;  %1004 = vst.msk [vmem:[%s1363_s24 + $0x190] sm:$0xff] %vm953_vm1, %v875_v17  ;;  %v758_v16 = vsel %vm436_vm0, %v415_v6, 0.0  ;;  %v285_v17 = vld [vmem:[%s1213_s21 + $0x368] sm:$0xff]  ;;  %v1802_v6 = vld [vmem:[#allocation2] ss:$0 sm:$0xff] }
 0x10d   : > { %723 = vadd.xlane.f32.xlu2 %v722_v18  ;;  %v284_v18 = vld [vmem:[%s1213_s21 + $0x360] sm:$0xff]  ;;  %v417_v20 = vmul.f32 %v1653_v5, %v285_v17  ;;  %v298_v17 = vld [vmem:[%s1213_s21 + $0x3d0] sm:$0xff] }
 0x10e   : > { %v416_v21 = vmul.f32 %v1653_v5, %v284_v18 }
 0x10f   : > { %v595_v25 = vpop.xlane.xlu1 %594  ;;  %v592_v26 = vpop.xlane.xlu0 %591 }
 0x110   : > { %v877_v27 = vadd.f32 %v1353_v14, %v595_v25  ;;  %v876_v28 = vadd.f32 %v1353_v14, %v592_v26  ;;  %v598_v29 = vpop.xlane.xlu2 %597 }
 0x111   : > { %v878_v32 = vadd.f32 %v1353_v14, %v598_v29  ;;  %v761_v29 = vsel %vm436_vm0, %v416_v21, 0.0 }
 0x112   : > { %1006 = vst.msk [vmem:[%s1363_s24 + $0x1a0] sm:$0xff] %vm953_vm1, %v877_v27 }
 0x113   : > { %1005 = vst.msk [vmem:[%s1363_s24 + $0x198] sm:$0xff] %vm953_vm1, %v876_v28  ;;  %v764_v28 = vsel %vm436_vm0, %v417_v20, 0.0  ;;  %v430_v20 = vmul.f32 %v1653_v5, %v298_v17 }
 0x114   : > { %729 = vadd.xlane.f32.xlu1 %v728_v30  ;;  %726 = vadd.xlane.f32.xlu0 %v725_v31  ;;  %1007 = vst.msk [vmem:[%s1363_s24 + $0x1a8] sm:$0xff] %vm953_vm1, %v878_v32  ;;  %v767_v31 = vsel %vm436_vm0, %v418_v22, 0.0  ;;  %v288_v32 = vld [vmem:[%s1213_s21 + $0x380] sm:$0xff] }
 0x115   : > { %732 = vadd.xlane.f32.xlu2 %v731_v33  ;;  %v287_v33 = vld [vmem:[%s1213_s21 + $0x378] sm:$0xff]  ;;  %v420_v35 = vmul.f32 %v1653_v5, %v288_v32  ;;  %v301_v32 = vld [vmem:[%s1213_s21 + $0x3e8] sm:$0xff] }
 0x116   : > { %v419_v36 = vmul.f32 %v1653_v5, %v287_v33 }
 0x117   : > { %v604_v40 = vpop.xlane.xlu1 %603  ;;  %v601_v41 = vpop.xlane.xlu0 %600 }
 0x118   : > { %v880_v42 = vadd.f32 %v1353_v14, %v604_v40  ;;  %v879_v43 = vadd.f32 %v1353_v14, %v601_v41  ;;  %v607_v44 = vpop.xlane.xlu2 %606 }
 0x119   : > { %v881_v47 = vadd.f32 %v1353_v14, %v607_v44  ;;  %v770_v44 = vsel %vm436_vm0, %v419_v36, 0.0 }
 0x11a   : > { %1009 = vst.msk [vmem:[%s1363_s24 + $0x1b8] sm:$0xff] %vm953_vm1, %v880_v42 }
 0x11b   : > { %1008 = vst.msk [vmem:[%s1363_s24 + $0x1b0] sm:$0xff] %vm953_vm1, %v879_v43  ;;  %v773_v43 = vsel %vm436_vm0, %v420_v35, 0.0  ;;  %v433_v35 = vmul.f32 %v1653_v5, %v301_v32 }
 0x11c   : > { %738 = vadd.xlane.f32.xlu1 %v737_v45  ;;  %735 = vadd.xlane.f32.xlu0 %v734_v46  ;;  %1010 = vst.msk [vmem:[%s1363_s24 + $0x1c0] sm:$0xff] %vm953_vm1, %v881_v47  ;;  %v776_v46 = vsel %vm436_vm0, %v421_v37, 0.0  ;;  %v291_v47 = vld [vmem:[%s1213_s21 + $0x398] sm:$0xff] }
 0x11d   : > { %741 = vadd.xlane.f32.xlu2 %v740_v48  ;;  %v290_v48 = vld [vmem:[%s1213_s21 + $0x390] sm:$0xff]  ;;  %v423_v50 = vmul.f32 %v1653_v5, %v291_v47 }
 0x11e   : > { %v422_v51 = vmul.f32 %v1653_v5, %v290_v48 }
 0x11f   : > { %v613_v55 = vpop.xlane.xlu1 %612  ;;  %v610_v56 = vpop.xlane.xlu0 %609 }
 0x120   : > { %v883_v57 = vadd.f32 %v1353_v14, %v613_v55  ;;  %v882_v58 = vadd.f32 %v1353_v14, %v610_v56  ;;  %v616_v59 = vpop.xlane.xlu2 %615 }
 0x121   : > { %v884_v62 = vadd.f32 %v1353_v14, %v616_v59  ;;  %v779_v59 = vsel %vm436_vm0, %v422_v51, 0.0 }
 0x122   : > { %1012 = vst.msk [vmem:[%s1363_s24 + $0x1d0] sm:$0xff] %vm953_vm1, %v883_v57 }
 0x123   : > { %1011 = vst.msk [vmem:[%s1363_s24 + $0x1c8] sm:$0xff] %vm953_vm1, %v882_v58  ;;  %v782_v58 = vsel %vm436_vm0, %v423_v50, 0.0 }
 0x124   : > { %747 = vadd.xlane.f32.xlu1 %v746_v60  ;;  %744 = vadd.xlane.f32.xlu0 %v743_v61  ;;  %1013 = vst.msk [vmem:[%s1363_s24 + $0x1d8] sm:$0xff] %vm953_vm1, %v884_v62  ;;  %v785_v61 = vsel %vm436_vm0, %v424_v52, 0.0  ;;  %v294_v62 = vld [vmem:[%s1213_s21 + $0x3b0] sm:$0xff] }
 0x125   : > { %750 = vadd.xlane.f32.xlu2 %v749_v63  ;;  %v293_v63 = vld [vmem:[%s1213_s21 + $0x3a8] sm:$0xff]  ;;  %v426_v2 = vmul.f32 %v1653_v5, %v294_v62 }
 0x127   : > { %v622_v7 = vpop.xlane.xlu1 %621  ;;  %v619_v8 = vpop.xlane.xlu0 %618 }
 0x128   : > { %v886_v9 = vadd.f32 %v1353_v14, %v622_v7  ;;  %v885_v10 = vadd.f32 %v1353_v14, %v619_v8  ;;  %v625_v11 = vpop.xlane.xlu2 %624 }
 0x129   : > { %v887_v15 = vadd.f32 %v1353_v14, %v625_v11 }
 0x12a   : > { %1015 = vst.msk [vmem:[%s1363_s24 + $0x1e8] sm:$0xff] %vm953_vm1, %v886_v9 }
 0x12b   : > { %1014 = vst.msk [vmem:[%s1363_s24 + $0x1e0] sm:$0xff] %vm953_vm1, %v885_v10  ;;  %v791_v10 = vsel %vm436_vm0, %v426_v2, 0.0 }
 0x12c   : > { %756 = vadd.xlane.f32.xlu1 %v755_v12  ;;  %753 = vadd.xlane.f32.xlu0 %v752_v13  ;;  %1016 = vst.msk [vmem:[%s1363_s24 + $0x1f0] sm:$0xff] %vm953_vm1, %v887_v15  ;;  %v794_v13 = vsel %vm436_vm0, %v427_v3, 0.0  ;;  %v297_v15 = vld [vmem:[%s1213_s21 + $0x3c8] sm:$0xff] }
 0x12d   : > { %759 = vadd.xlane.f32.xlu2 %v758_v16  ;;  %v296_v16 = vld [vmem:[%s1213_s21 + $0x3c0] sm:$0xff]  ;;  %v429_v18 = vmul.f32 %v1653_v5, %v297_v15 }
 0x12e   : > { %v428_v19 = vmul.f32 %v1653_v5, %v296_v16 }
 0x12f   : > { %v631_v23 = vpop.xlane.xlu1 %630  ;;  %v628_v24 = vpop.xlane.xlu0 %627 }
 0x130   : > { %v889_v25 = vadd.f32 %v1353_v14, %v631_v23  ;;  %v888_v26 = vadd.f32 %v1353_v14, %v628_v24  ;;  %v634_v27 = vpop.xlane.xlu2 %633 }
 0x131   : > { %v890_v30 = vadd.f32 %v1353_v14, %v634_v27  ;;  %v797_v27 = vsel %vm436_vm0, %v428_v19, 0.0 }
 0x132   : > { %1018 = vst.msk [vmem:[%s1363_s24 + $0x200] sm:$0xff] %vm953_vm1, %v889_v25 }
 0x133   : > { %1017 = vst.msk [vmem:[%s1363_s24 + $0x1f8] sm:$0xff] %vm953_vm1, %v888_v26  ;;  %v800_v26 = vsel %vm436_vm0, %v429_v18, 0.0 }
 0x134   : > { %765 = vadd.xlane.f32.xlu1 %v764_v28  ;;  %762 = vadd.xlane.f32.xlu0 %v761_v29  ;;  %1019 = vst.msk [vmem:[%s1363_s24 + $0x208] sm:$0xff] %vm953_vm1, %v890_v30  ;;  %v803_v29 = vsel %vm436_vm0, %v430_v20, 0.0  ;;  %v300_v30 = vld [vmem:[%s1213_s21 + $0x3e0] sm:$0xff] }
 0x135   : > { %768 = vadd.xlane.f32.xlu2 %v767_v31  ;;  %v299_v31 = vld [vmem:[%s1213_s21 + $0x3d8] sm:$0xff]  ;;  %v432_v33 = vmul.f32 %v1653_v5, %v300_v30 }
 0x136   : > { %v431_v34 = vmul.f32 %v1653_v5, %v299_v31 }
 0x137   : > { %v640_v38 = vpop.xlane.xlu1 %639  ;;  %v637_v39 = vpop.xlane.xlu0 %636 }
 0x138   : > { %v892_v40 = vadd.f32 %v1353_v14, %v640_v38  ;;  %v891_v41 = vadd.f32 %v1353_v14, %v637_v39  ;;  %v643_v42 = vpop.xlane.xlu2 %642 }
 0x139   : > { %v893_v45 = vadd.f32 %v1353_v14, %v643_v42  ;;  %v806_v42 = vsel %vm436_vm0, %v431_v34, 0.0 }
 0x13a   : > { %1021 = vst.msk [vmem:[%s1363_s24 + $0x218] sm:$0xff] %vm953_vm1, %v892_v40 }
 0x13b   : > { %1020 = vst.msk [vmem:[%s1363_s24 + $0x210] sm:$0xff] %vm953_vm1, %v891_v41  ;;  %v809_v41 = vsel %vm436_vm0, %v432_v33, 0.0 }
 0x13c   : > { %774 = vadd.xlane.f32.xlu1 %v773_v43  ;;  %771 = vadd.xlane.f32.xlu0 %v770_v44  ;;  %1022 = vst.msk [vmem:[%s1363_s24 + $0x220] sm:$0xff] %vm953_vm1, %v893_v45  ;;  %v812_v44 = vsel %vm436_vm0, %v433_v35, 0.0  ;;  %v303_v45 = vld [vmem:[%s1213_s21 + $0x3f8] sm:$0xff] }
 0x13d   : > { %777 = vadd.xlane.f32.xlu2 %v776_v46  ;;  %v302_v46 = vld [vmem:[%s1213_s21 + $0x3f0] sm:$0xff]  ;;  %v435_v47 = vmul.f32 %v1653_v5, %v303_v45 }
 0x13e   : > { %v434_v48 = vmul.f32 %v1653_v5, %v302_v46 }
 0x13f   : > { %v649_v53 = vpop.xlane.xlu1 %648  ;;  %v646_v54 = vpop.xlane.xlu0 %645 }
 0x140   : > { %v895_v55 = vadd.f32 %v1353_v14, %v649_v53  ;;  %v894_v56 = vadd.f32 %v1353_v14, %v646_v54  ;;  %v652_v57 = vpop.xlane.xlu2 %651  ;;  %v818_v54 = vsel %vm436_vm0, %v435_v47, 0.0 }
 0x141   : > { %v896_v60 = vadd.f32 %v1353_v14, %v652_v57  ;;  %v425_v14 = vmul.f32 %v1653_v5, %v293_v63 }
 0x142   : > { %1024 = vst.msk [vmem:[%s1363_s24 + $0x230] sm:$0xff] %vm953_vm1, %v895_v55  ;;  %v815_v55 = vsel %vm436_vm0, %v434_v48, 0.0 }
 0x143   : > { %1023 = vst.msk [vmem:[%s1363_s24 + $0x228] sm:$0xff] %vm953_vm1, %v894_v56  ;;  %v788_v11 = vsel %vm436_vm0, %v425_v14, 0.0 }
 0x144   : > { %783 = vadd.xlane.f32.xlu1 %v782_v58  ;;  %780 = vadd.xlane.f32.xlu0 %v779_v59  ;;  %1025 = vst.msk [vmem:[%s1363_s24 + $0x238] sm:$0xff] %vm953_vm1, %v896_v60 }
 0x145   : > { %786 = vadd.xlane.f32.xlu2 %v785_v61 }
 0x147   : > { %v658_v1 = vpop.xlane.xlu1 %657  ;;  %v655_v4 = vpop.xlane.xlu0 %654 }
 0x148   : > { %v898_v7 = vadd.f32 %v1802_v6, %v658_v1  ;;  %v897_v8 = vadd.f32 %v1802_v6, %v655_v4  ;;  %v661_v9 = vpop.xlane.xlu2 %660 }
 0x149   : > { %v899_v12 = vadd.f32 %v1802_v6, %v661_v9 }
 0x14a   : > { %1027 = vst.msk [vmem:[%s1363_s24 + $0x248] sm:$0xff] %vm953_vm1, %v898_v7 }
 0x14b   : > { %1026 = vst.msk [vmem:[%s1363_s24 + $0x240] sm:$0xff] %vm953_vm1, %v897_v8 }
 0x14c   : > { %792 = vadd.xlane.f32.xlu1 %v791_v10  ;;  %789 = vadd.xlane.f32.xlu0 %v788_v11  ;;  %1028 = vst.msk [vmem:[%s1363_s24 + $0x250] sm:$0xff] %vm953_vm1, %v899_v12 }
 0x14d   : > { %795 = vadd.xlane.f32.xlu2 %v794_v13 }
 0x14f   : > { %v667_v21 = vpop.xlane.xlu1 %666  ;;  %v664_v22 = vpop.xlane.xlu0 %663 }
 0x150   : > { %v901_v23 = vadd.f32 %v1802_v6, %v667_v21  ;;  %v900_v24 = vadd.f32 %v1802_v6, %v664_v22  ;;  %v670_v25 = vpop.xlane.xlu2 %669 }
 0x151   : > { %v902_v28 = vadd.f32 %v1802_v6, %v670_v25 }
 0x152   : > { %1030 = vst.msk [vmem:[%s1363_s24 + $0x260] sm:$0xff] %vm953_vm1, %v901_v23 }
 0x153   : > { %1029 = vst.msk [vmem:[%s1363_s24 + $0x258] sm:$0xff] %vm953_vm1, %v900_v24 }
 0x154   : > { %801 = vadd.xlane.f32.xlu1 %v800_v26  ;;  %798 = vadd.xlane.f32.xlu0 %v797_v27  ;;  %1031 = vst.msk [vmem:[%s1363_s24 + $0x268] sm:$0xff] %vm953_vm1, %v902_v28 }
 0x155   : > { %804 = vadd.xlane.f32.xlu2 %v803_v29 }
 0x157   : > { %v676_v36 = vpop.xlane.xlu1 %675  ;;  %v673_v37 = vpop.xlane.xlu0 %672 }
 0x158   : > { %v904_v38 = vadd.f32 %v1802_v6, %v676_v36  ;;  %v903_v39 = vadd.f32 %v1802_v6, %v673_v37  ;;  %v679_v40 = vpop.xlane.xlu2 %678 }
 0x159   : > { %v905_v43 = vadd.f32 %v1802_v6, %v679_v40 }
 0x15a   : > { %1033 = vst.msk [vmem:[%s1363_s24 + $0x278] sm:$0xff] %vm953_vm1, %v904_v38 }
 0x15b   : > { %1032 = vst.msk [vmem:[%s1363_s24 + $0x270] sm:$0xff] %vm953_vm1, %v903_v39 }
 0x15c   : > { %810 = vadd.xlane.f32.xlu1 %v809_v41  ;;  %807 = vadd.xlane.f32.xlu0 %v806_v42  ;;  %1034 = vst.msk [vmem:[%s1363_s24 + $0x280] sm:$0xff] %vm953_vm1, %v905_v43 }
 0x15d   : > { %813 = vadd.xlane.f32.xlu2 %v812_v44 }
 0x15f   : > { %v685_v49 = vpop.xlane.xlu1 %684  ;;  %v682_v50 = vpop.xlane.xlu0 %681 }
 0x160   : > { %v907_v51 = vadd.f32 %v1802_v6, %v685_v49  ;;  %v906_v52 = vadd.f32 %v1802_v6, %v682_v50  ;;  %v688_v53 = vpop.xlane.xlu2 %687 }
 0x161   : > { %v908_v56 = vadd.f32 %v1802_v6, %v688_v53 }
 0x162   : > { %1036 = vst.msk [vmem:[%s1363_s24 + $0x290] sm:$0xff] %vm953_vm1, %v907_v51 }
 0x163   : > { %1035 = vst.msk [vmem:[%s1363_s24 + $0x288] sm:$0xff] %vm953_vm1, %v906_v52 }
 0x164   : > { %819 = vadd.xlane.f32.xlu1 %v818_v54  ;;  %816 = vadd.xlane.f32.xlu0 %v815_v55  ;;  %1037 = vst.msk [vmem:[%s1363_s24 + $0x298] sm:$0xff] %vm953_vm1, %v908_v56 }
 0x167   : > { %v694_v5 = vpop.xlane.xlu1 %693  ;;  %v691_v57 = vpop.xlane.xlu0 %690 }
 0x168   : > { %v910_v58 = vadd.f32 %v1802_v6, %v694_v5  ;;  %v909_v59 = vadd.f32 %v1802_v6, %v691_v57  ;;  %v697_v60 = vpop.xlane.xlu2 %696 }
 0x169   : > { %v911_v61 = vadd.f32 %v1802_v6, %v697_v60 }
 0x16a   : > { %1039 = vst.msk [vmem:[%s1363_s24 + $0x2a8] sm:$0xff] %vm953_vm1, %v910_v58 }
 0x16b   : > { %1038 = vst.msk [vmem:[%s1363_s24 + $0x2a0] sm:$0xff] %vm953_vm1, %v909_v59 }
 0x16c   : > { %1040 = vst.msk [vmem:[%s1363_s24 + $0x2b0] sm:$0xff] %vm953_vm1, %v911_v61 }
 0x16f   : > { %v703_v62 = vpop.xlane.xlu1 %702  ;;  %v700_v63 = vpop.xlane.xlu0 %699 }
 0x170   : > { %v913_v0 = vadd.f32 %v1802_v6, %v703_v62  ;;  %v912_v2 = vadd.f32 %v1802_v6, %v700_v63  ;;  %v706_v14 = vpop.xlane.xlu2 %705 }
 0x171   : > { %v914_v3 = vadd.f32 %v1802_v6, %v706_v14 }
 0x172   : > { %1042 = vst.msk [vmem:[%s1363_s24 + $0x2c0] sm:$0xff] %vm953_vm1, %v913_v0 }
 0x173   : > { %1041 = vst.msk [vmem:[%s1363_s24 + $0x2b8] sm:$0xff] %vm953_vm1, %v912_v2 }
 0x174   : > { %1043 = vst.msk [vmem:[%s1363_s24 + $0x2c8] sm:$0xff] %vm953_vm1, %v914_v3 }
 0x177   : > { %v712_v1 = vpop.xlane.xlu1 %711  ;;  %v709_v4 = vpop.xlane.xlu0 %708 }
 0x178   : > { %v916_v7 = vadd.f32 %v1802_v6, %v712_v1  ;;  %v915_v8 = vadd.f32 %v1802_v6, %v709_v4  ;;  %v715_v9 = vpop.xlane.xlu2 %714 }
 0x179   : > { %v917_v10 = vadd.f32 %v1802_v6, %v715_v9 }
 0x17a   : > { %1045 = vst.msk [vmem:[%s1363_s24 + $0x2d8] sm:$0xff] %vm953_vm1, %v916_v7 }
 0x17b   : > { %1044 = vst.msk [vmem:[%s1363_s24 + $0x2d0] sm:$0xff] %vm953_vm1, %v915_v8 }
 0x17c   : > { %1046 = vst.msk [vmem:[%s1363_s24 + $0x2e0] sm:$0xff] %vm953_vm1, %v917_v10 }
 0x17f   : > { %v721_v11 = vpop.xlane.xlu1 %720  ;;  %v718_v12 = vpop.xlane.xlu0 %717 }
 0x180   : > { %v919_v13 = vadd.f32 %v1802_v6, %v721_v11  ;;  %v918_v15 = vadd.f32 %v1802_v6, %v718_v12  ;;  %v724_v16 = vpop.xlane.xlu2 %723 }
 0x181   : > { %v920_v17 = vadd.f32 %v1802_v6, %v724_v16 }
 0x182   : > { %1048 = vst.msk [vmem:[%s1363_s24 + $0x2f0] sm:$0xff] %vm953_vm1, %v919_v13 }
 0x183   : > { %1047 = vst.msk [vmem:[%s1363_s24 + $0x2e8] sm:$0xff] %vm953_vm1, %v918_v15 }
 0x184   : > { %1049 = vst.msk [vmem:[%s1363_s24 + $0x2f8] sm:$0xff] %vm953_vm1, %v920_v17 }
 0x187   : > { %v730_v18 = vpop.xlane.xlu1 %729  ;;  %v727_v19 = vpop.xlane.xlu0 %726 }
 0x188   : > { %v922_v20 = vadd.f32 %v1802_v6, %v730_v18  ;;  %v921_v21 = vadd.f32 %v1802_v6, %v727_v19  ;;  %v733_v22 = vpop.xlane.xlu2 %732 }
 0x189   : > { %v923_v23 = vadd.f32 %v1802_v6, %v733_v22 }
 0x18a   : > { %1051 = vst.msk [vmem:[%s1363_s24 + $0x308] sm:$0xff] %vm953_vm1, %v922_v20 }
 0x18b   : > { %1050 = vst.msk [vmem:[%s1363_s24 + $0x300] sm:$0xff] %vm953_vm1, %v921_v21 }
 0x18c   : > { %1052 = vst.msk [vmem:[%s1363_s24 + $0x310] sm:$0xff] %vm953_vm1, %v923_v23 }
 0x18f   : > { %v739_v24 = vpop.xlane.xlu1 %738  ;;  %v736_v25 = vpop.xlane.xlu0 %735 }
 0x190   : > { %v925_v26 = vadd.f32 %v1802_v6, %v739_v24  ;;  %v924_v27 = vadd.f32 %v1802_v6, %v736_v25  ;;  %v742_v28 = vpop.xlane.xlu2 %741 }
 0x191   : > { %v926_v29 = vadd.f32 %v1802_v6, %v742_v28 }
 0x192   : > { %1054 = vst.msk [vmem:[%s1363_s24 + $0x320] sm:$0xff] %vm953_vm1, %v925_v26 }
 0x193   : > { %1053 = vst.msk [vmem:[%s1363_s24 + $0x318] sm:$0xff] %vm953_vm1, %v924_v27 }
 0x194   : > { %1055 = vst.msk [vmem:[%s1363_s24 + $0x328] sm:$0xff] %vm953_vm1, %v926_v29 }
 0x197   : > { %v748_v30 = vpop.xlane.xlu1 %747  ;;  %v745_v31 = vpop.xlane.xlu0 %744 }
 0x198   : > { %v928_v32 = vadd.f32 %v1802_v6, %v748_v30  ;;  %v927_v33 = vadd.f32 %v1802_v6, %v745_v31  ;;  %v751_v34 = vpop.xlane.xlu2 %750 }
 0x199   : > { %v929_v35 = vadd.f32 %v1802_v6, %v751_v34 }
 0x19a   : > { %1057 = vst.msk [vmem:[%s1363_s24 + $0x338] sm:$0xff] %vm953_vm1, %v928_v32 }
 0x19b   : > { %1056 = vst.msk [vmem:[%s1363_s24 + $0x330] sm:$0xff] %vm953_vm1, %v927_v33 }
 0x19c   : > { %1058 = vst.msk [vmem:[%s1363_s24 + $0x340] sm:$0xff] %vm953_vm1, %v929_v35 }
 0x19f   : > { %v757_v36 = vpop.xlane.xlu1 %756  ;;  %v754_v37 = vpop.xlane.xlu0 %753 }
 0x1a0   : > { %v931_v38 = vadd.f32 %v1802_v6, %v757_v36  ;;  %v930_v39 = vadd.f32 %v1802_v6, %v754_v37  ;;  %v760_v40 = vpop.xlane.xlu2 %759 }
 0x1a1   : > { %v932_v41 = vadd.f32 %v1802_v6, %v760_v40 }
 0x1a2   : > { %1060 = vst.msk [vmem:[%s1363_s24 + $0x350] sm:$0xff] %vm953_vm1, %v931_v38 }
 0x1a3   : > { %1059 = vst.msk [vmem:[%s1363_s24 + $0x348] sm:$0xff] %vm953_vm1, %v930_v39 }
 0x1a4   : > { %1061 = vst.msk [vmem:[%s1363_s24 + $0x358] sm:$0xff] %vm953_vm1, %v932_v41 }
 0x1a7   : > { %v766_v42 = vpop.xlane.xlu1 %765  ;;  %v763_v43 = vpop.xlane.xlu0 %762 }
 0x1a8   : > { %v934_v44 = vadd.f32 %v1802_v6, %v766_v42  ;;  %v933_v45 = vadd.f32 %v1802_v6, %v763_v43  ;;  %v769_v46 = vpop.xlane.xlu2 %768 }
 0x1a9   : > { %v935_v47 = vadd.f32 %v1802_v6, %v769_v46 }
 0x1aa   : > { %1063 = vst.msk [vmem:[%s1363_s24 + $0x368] sm:$0xff] %vm953_vm1, %v934_v44 }
 0x1ab   : > { %1062 = vst.msk [vmem:[%s1363_s24 + $0x360] sm:$0xff] %vm953_vm1, %v933_v45 }
 0x1ac   : > { %1064 = vst.msk [vmem:[%s1363_s24 + $0x370] sm:$0xff] %vm953_vm1, %v935_v47 }
 0x1af   : > { %v775_v48 = vpop.xlane.xlu1 %774  ;;  %v772_v49 = vpop.xlane.xlu0 %771 }
 0x1b0   : > { %v937_v50 = vadd.f32 %v1802_v6, %v775_v48  ;;  %v936_v51 = vadd.f32 %v1802_v6, %v772_v49  ;;  %v778_v52 = vpop.xlane.xlu2 %777 }
 0x1b1   : > { %v938_v53 = vadd.f32 %v1802_v6, %v778_v52 }
 0x1b2   : > { %1066 = vst.msk [vmem:[%s1363_s24 + $0x380] sm:$0xff] %vm953_vm1, %v937_v50 }
 0x1b3   : > { %1065 = vst.msk [vmem:[%s1363_s24 + $0x378] sm:$0xff] %vm953_vm1, %v936_v51 }
 0x1b4   : > { %1067 = vst.msk [vmem:[%s1363_s24 + $0x388] sm:$0xff] %vm953_vm1, %v938_v53 }
 0x1b7   : > { %v784_v54 = vpop.xlane.xlu1 %783  ;;  %v781_v55 = vpop.xlane.xlu0 %780 }
 0x1b8   : > { %v940_v56 = vadd.f32 %v1802_v6, %v784_v54  ;;  %v939_v5 = vadd.f32 %v1802_v6, %v781_v55  ;;  %v787_v57 = vpop.xlane.xlu2 %786 }
 0x1b9   : > { %v941_v58 = vadd.f32 %v1802_v6, %v787_v57 }
 0x1ba   : > { %1069 = vst.msk [vmem:[%s1363_s24 + $0x398] sm:$0xff] %vm953_vm1, %v940_v56 }
 0x1bb   : > { %1068 = vst.msk [vmem:[%s1363_s24 + $0x390] sm:$0xff] %vm953_vm1, %v939_v5 }
 0x1bc   : > { %1070 = vst.msk [vmem:[%s1363_s24 + $0x3a0] sm:$0xff] %vm953_vm1, %v941_v58 }
 0x1bf   : > { %v793_v59 = vpop.xlane.xlu1 %792  ;;  %v790_v60 = vpop.xlane.xlu0 %789 }
 0x1c0   : > { %v943_v61 = vadd.f32 %v1802_v6, %v793_v59  ;;  %v942_v62 = vadd.f32 %v1802_v6, %v790_v60  ;;  %v796_v63 = vpop.xlane.xlu2 %795 }
 0x1c1   : > { %v944_v0 = vadd.f32 %v1802_v6, %v796_v63 }
 0x1c2   : > { %1072 = vst.msk [vmem:[%s1363_s24 + $0x3b0] sm:$0xff] %vm953_vm1, %v943_v61 }
 0x1c3   : > { %1071 = vst.msk [vmem:[%s1363_s24 + $0x3a8] sm:$0xff] %vm953_vm1, %v942_v62 }
 0x1c4   : > { %1073 = vst.msk [vmem:[%s1363_s24 + $0x3b8] sm:$0xff] %vm953_vm1, %v944_v0 }
 0x1c7   : > { %v802_v2 = vpop.xlane.xlu1 %801  ;;  %v799_v14 = vpop.xlane.xlu0 %798 }
 0x1c8   : > { %v946_v3 = vadd.f32 %v1802_v6, %v802_v2  ;;  %v945_v1 = vadd.f32 %v1802_v6, %v799_v14  ;;  %v805_v4 = vpop.xlane.xlu2 %804 }
 0x1c9   : > { %v947_v7 = vadd.f32 %v1802_v6, %v805_v4 }
 0x1ca   : > { %1075 = vst.msk [vmem:[%s1363_s24 + $0x3c8] sm:$0xff] %vm953_vm1, %v946_v3 }
 0x1cb   : > { %1074 = vst.msk [vmem:[%s1363_s24 + $0x3c0] sm:$0xff] %vm953_vm1, %v945_v1 }
 0x1cc   : > { %1076 = vst.msk [vmem:[%s1363_s24 + $0x3d0] sm:$0xff] %vm953_vm1, %v947_v7 }
 0x1cf   : > { %v811_v8 = vpop.xlane.xlu1 %810  ;;  %v808_v9 = vpop.xlane.xlu0 %807 }
 0x1d0   : > { %v949_v10 = vadd.f32 %v1802_v6, %v811_v8  ;;  %v948_v11 = vadd.f32 %v1802_v6, %v808_v9  ;;  %v814_v12 = vpop.xlane.xlu2 %813 }
 0x1d1   : > { %v950_v13 = vadd.f32 %v1802_v6, %v814_v12 }
 0x1d2   : > { %1078 = vst.msk [vmem:[%s1363_s24 + $0x3e0] sm:$0xff] %vm953_vm1, %v949_v10 }
 0x1d3   : > { %1077 = vst.msk [vmem:[%s1363_s24 + $0x3d8] sm:$0xff] %vm953_vm1, %v948_v11 }
 0x1d4   : > { %1079 = vst.msk [vmem:[%s1363_s24 + $0x3e8] sm:$0xff] %vm953_vm1, %v950_v13 }
 0x1d7   : > { %v820_v15 = vpop.xlane.xlu1 %819  ;;  %v817_v16 = vpop.xlane.xlu0 %816 }
 0x1d8   : > { %v952_v17 = vadd.f32 %v1802_v6, %v820_v15  ;;  %v951_v18 = vadd.f32 %v1802_v6, %v817_v16 }
 0x1da   : > { %1081 = vst.msk [vmem:[%s1363_s24 + $0x3f8] sm:$0xff] %vm953_vm1, %v952_v17 }
 0x1db   : > { %1080 = vst.msk [vmem:[%s1363_s24 + $0x3f0] sm:$0xff] %vm953_vm1, %v951_v18 }
 0x1dc PF: > { %s15_s14 = sadd.s32 1, %s1167_s14  }
 0x1dd   : > { %p12_p4 = scmp.ge.s32.totalorder %s15_s14, 4  }
 0x1df   :  { %14 = sbr.rel (!%p12_p4) target bundleno = 3 (0x3), region = 62 }

</bundles_post_ra>
